<compile_context>
chip_gen: v5e
topology: v5e:2x2
jax: 0.10.0
libtpu: 0.0.40
codegen_flags: <defaults>
</compile_context>

<pallas_src>
import functools
import math

import jax
import jax.numpy as jnp
import numpy as np
from jax.experimental import pallas as pl
from jax.experimental.pallas import tpu as pltpu


def _cdiv(a, b):
    return -(-a // b)


def _round_up(a, b):
    return _cdiv(a, b) * b


def _gem_kernel(p_ref, x_ref, o_ref, acc_ref, *,
                eps, cols, tile_cols, needs_mask, p_static, wide_acc):
    # p_ref   : (1,) f32 in SMEM          (only read on the runtime-p path)
    # x_ref   : (tile_rows, tile_cols) VMEM input tile
    # o_ref   : (tile_rows, 1) VMEM output tile (resident across the col axis)
    # acc_ref : (tile_rows, acc_w) f32 VMEM running sum of clamp(x, eps) ** p
    k = pl.program_id(1)
    nk = pl.num_programs(1)

    @pl.when(k == 0)
    def _():
        acc_ref[...] = jnp.zeros_like(acc_ref)

    x = x_ref[...].astype(jnp.float32)
    x = jnp.maximum(x, jnp.float32(eps))            # clamp(min=eps) -> x > 0

    if p_static is not None:
        # Integer p: pure VPU multiplies, no EUP transcendentals.
        xp = x
        for _ in range(int(p_static) - 1):
            xp = xp * x
    else:
        # Runtime p: exp(p * log(x)) -- 2 transcendentals/element (EUP-bound on v7x).
        p = p_ref[0]
        xp = jnp.exp(p * jnp.log(x))

    def _partial(v):
        if wide_acc:
            # Lane-dense partial sums (plain VPU adds over 128-lane groups);
            # the cross-lane reduce is deferred to the finalize.
            s = v[:, 0:128]
            for gi in range(1, tile_cols // 128):
                s = s + v[:, gi * 128:(gi + 1) * 128]
            return s
        return jnp.sum(v, axis=-1, keepdims=True)

    if needs_mask:
        # Only the LAST column tile overlaps the ragged column edge; gate the
        # per-element mask so every other tile never pays for it.
        def _masked_partial(v):
            col0 = k * tile_cols
            local = jax.lax.broadcasted_iota(jnp.int32, v.shape, 1)
            return _partial(jnp.where(col0 + local < cols, v, 0.0))

        partial = jax.lax.cond(k == nk - 1, _masked_partial, _partial, xp)
    else:
        partial = _partial(xp)

    acc_ref[...] += partial

    @pl.when(k == nk - 1)
    def _():
        s = acc_ref[...]
        if wide_acc:
            s = jnp.sum(s, axis=-1, keepdims=True)
        if p_static is not None:
            inv_p = jnp.float32(1.0 / float(p_static))
        else:
            inv_p = jnp.float32(1.0) / p_ref[0]
        # mean ** (1/p) == exp((log(sum) - log(HW)) * (1/p))  (fold /HW into exp)
        o_ref[...] = jnp.exp(
            (jnp.log(s) - jnp.float32(math.log(cols))) * inv_p
        ).astype(o_ref.dtype)


def _chip_budgets():
    """(target_tile_bytes, vmem_limit_bytes) keyed off the local TPU generation."""
    vmem_cap = None
    try:
        vmem_cap = getattr(pltpu.get_tpu_info(), "vmem_capacity_bytes", None)
    except Exception:
        vmem_cap = None
    if vmem_cap is not None and vmem_cap > 64 * 1024 * 1024:
        # v5e / v6e: 128 MiB physical VMEM -> bigger tiles amortize per-step cost.
        return 28 * 1024 * 1024, 96 * 1024 * 1024
    # v7x (64 MiB per TC) or unknown: stay conservative.
    return 12 * 1024 * 1024, 48 * 1024 * 1024


def gem_pallas(x, p, eps=1e-06, *, p_static=None,
               target_tile_bytes=None, max_tile_cols=16384,
               vmem_limit_bytes=None):
    """GeM pooling.  x: (N, C, H, W); p: (1,) float32.  Returns (N, C, 1, 1).

    If p is a concrete array with an integer value (the GeM default 3), the
    kernel automatically uses repeated VPU multiplies instead of exp/log.
    """
    N, C, H, W = x.shape
    rows = N * C
    cols = H * W
    x2 = x.reshape(rows, cols)

    itemsize = jnp.dtype(x.dtype).itemsize
    LANE = 128
    SUB = max(8, 32 // itemsize)        # sublane quantum: 8 f32, 16 bf16, 32 i8/fp8

    # ---- p specialization ----------------------------------------------------
    p_concrete = None
    try:
        p_concrete = float(np.asarray(p).reshape(-1)[0])
    except Exception:                   # traced p (e.g. under jit): runtime path
        p_concrete = None
    if p_static is None and p_concrete is not None:
        if p_concrete == round(p_concrete) and 1 <= int(round(p_concrete)) <= 8:
            p_static = int(round(p_concrete))
    if p_static is not None and p_concrete is not None:
        assert abs(p_concrete - float(p_static)) < 1e-6, (
            "p_static does not match the runtime value of p")
    # TODO(synk): when p is traced AND non-integer, exp(p*log(x)) is EUP-bound
    # on v7x (2 transcendentals/element); pass a concrete p when it is fixed.

    # ---- per-generation budgets ------------------------------------------------
    auto_tile_bytes, auto_vmem_limit = _chip_budgets()
    if target_tile_bytes is None:
        target_tile_bytes = auto_tile_bytes
    if vmem_limit_bytes is None:
        vmem_limit_bytes = auto_vmem_limit

    # ---- column tiling (no padding; full-extent block when it fits) -----------
    if cols <= max_tile_cols:
        n_col_tiles = 1
        tile_cols = cols                # full-dim block: exempt from 128 rule
    else:
        n_col_tiles = _cdiv(cols, max_tile_cols)
        tile_cols = _round_up(_cdiv(cols, n_col_tiles), LANE)
        n_col_tiles = _cdiv(cols, tile_cols)
        if n_col_tiles == 1:
            tile_cols = cols
    needs_mask = (n_col_tiles > 1) and (cols % tile_cols != 0)
    wide_acc = n_col_tiles > 1          # tile_cols is a multiple of 128 here
    acc_w = 128 if wide_acc else 1

    # ---- row tiling (dtype-aware, >=2 tiles for v7x's two TCs when possible) --
    if rows <= SUB:
        tile_rows = rows                # full-extent block (exempt from SUB rule)
    else:
        budget_rows = (target_tile_bytes // itemsize // max(tile_cols, 1)) // SUB * SUB
        budget_rows = max(SUB, budget_rows)
        balance_cap = _round_up(_cdiv(rows, 2), SUB)
        tile_rows = min(budget_rows, balance_cap)
    n_row_tiles = _cdiv(rows, tile_rows)

    kernel = functools.partial(
        _gem_kernel, eps=eps, cols=cols, tile_cols=tile_cols,
        needs_mask=needs_mask, p_static=p_static, wide_acc=wide_acc)

    out = pl.pallas_call(
        kernel,
        out_shape=jax.ShapeDtypeStruct((rows, 1), x.dtype),
        grid_spec=pltpu.PrefetchScalarGridSpec(
            num_scalar_prefetch=0,
            grid=(n_row_tiles, n_col_tiles),
            in_specs=[
                pl.BlockSpec(memory_space=pltpu.MemorySpace.SMEM),          # p
                pl.BlockSpec((tile_rows, tile_cols), lambda i, k: (i, k)),  # x
            ],
            out_specs=pl.BlockSpec((tile_rows, 1), lambda i, k: (i, 0)),
            scratch_shapes=[pltpu.VMEM((tile_rows, acc_w), jnp.float32)],
        ),
        compiler_params=pltpu.CompilerParams(
            dimension_semantics=("parallel", "arbitrary"),
            vmem_limit_bytes=vmem_limit_bytes,
        ),
    )(jnp.asarray(p, jnp.float32).reshape(1), x2)

    return out.reshape(N, C, 1, 1)


def gem_ref(x, p, eps=1e-06):
    """Pure-JAX reference matching the PyTorch semantics."""
    xc = jnp.maximum(x, eps) ** p[0]
    return jnp.mean(xc, axis=(-2, -1), keepdims=True) ** (1.0 / p[0])


if __name__ == "__main__":
    key = jax.random.PRNGKey(0)
    N, C, H, W = 2, 4, 16, 16
    x = jax.random.uniform(key, (N, C, H, W), dtype=jnp.float32)

    # Parameter p initialized deterministically as in GeM.__init__ (p=3).
    p = jnp.ones((1,), dtype=jnp.float32) * 3.0
    ref = gem_ref(x, p)

    # Default path: p is concrete and integer-valued -> VPU-multiply fast path.
    out = jax.block_until_ready(gem_pallas(x, p))
    assert out.shape == (N, C, 1, 1)
    np.testing.assert_allclose(np.asarray(out), np.asarray(ref), rtol=1e-4, atol=1e-6)

    # Fractional p -> runtime exp(p*log(x)) path (EUP path exercised).
    p_frac = jnp.ones((1,), dtype=jnp.float32) * 3.5
    out_frac = jax.block_until_ready(gem_pallas(x, p_frac))
    np.testing.assert_allclose(np.asarray(out_frac), np.asarray(gem_ref(x, p_frac)),
                               rtol=1e-4, atol=1e-6)

    # Under jit, p is traced -> runtime path even for integer p.
    out_jit = jax.block_until_ready(jax.jit(gem_pallas)(x, p))
    np.testing.assert_allclose(np.asarray(out_jit), np.asarray(ref), rtol=1e-4, atol=1e-6)

    # bf16 input exercises the dtype-aware tiling (SUB=16, bf16 output cast).
    xb = x.astype(jnp.bfloat16)
    out_b = jax.block_until_ready(gem_pallas(xb, p))
    np.testing.assert_allclose(np.asarray(out_b, dtype=np.float32),
                               np.asarray(gem_ref(xb.astype(jnp.float32), p)),
                               rtol=2e-2, atol=2e-2)

    print("KERNEL_OK")
</pallas_src>

<mosaic_0001>
module attributes {stable_mosaic.version = 11 : i64} {
  func.func @_gem_kernel(%arg0: i32, %arg1: i32, %arg2: memref<1xf32, #tpu.memory_space<smem>>, %arg3: memref<8x256xf32, #tpu.memory_space<vmem>>, %arg4: memref<8x1xf32, #tpu.memory_space<vmem>>, %arg5: memref<8x1xf32, #tpu.memory_space<vmem>>) attributes {dimension_semantics = [#tpu.dimension_semantics<parallel>, #tpu.dimension_semantics<arbitrary>], iteration_bounds = array<i64: 1, 1>, scalar_prefetch = 0 : i64, scratch_operands = 1 : i64, tpu.core_type = #tpu.core_type<tc>, window_params = [{transform_indices = @transform_0, window_bounds = array<i64: 1>}, {transform_indices = @transform_1, window_bounds = array<i64: 8, 256>}, {transform_indices = @transform_2, window_bounds = array<i64: 8, 1>}]} {
    %c0_i32 = arith.constant 0 : i32
    %0 = arith.cmpi eq, %arg1, %c0_i32 : i32
    %1 = arith.extui %0 : i1 to i32
    %c0_i32_0 = arith.constant 0 : i32
    %2 = arith.cmpi ne, %1, %c0_i32_0 : i32
    scf.if %2 {
      %cst_9 = arith.constant 0.000000e+00 : f32
      %16 = vector.broadcast %cst_9 : f32 to vector<8x1xf32>
      %c0_10 = arith.constant 0 : index
      %c0_11 = arith.constant 0 : index
      %17 = vector.load %arg5[%c0_10, %c0_11] : memref<8x1xf32, #tpu.memory_space<vmem>>, vector<8x1xf32>
      tpu.vector_store %arg5[%c0_10, %c0_11], %16 {strides = array<i32>} : memref<8x1xf32, #tpu.memory_space<vmem>>, vector<8x1xf32>,
    } else {
    }
    %c0 = arith.constant 0 : index
    %c0_1 = arith.constant 0 : index
    %3 = vector.load %arg3[%c0, %c0_1] : memref<8x256xf32, #tpu.memory_space<vmem>>, vector<8x256xf32>
    %cst = arith.constant 9.99999997E-7 : f32
    %4 = vector.broadcast %cst : f32 to vector<8x256xf32>
    %5 = arith.maximumf %3, %4 : vector<8x256xf32>
    %6 = arith.mulf %5, %5 : vector<8x256xf32>
    %7 = arith.mulf %6, %5 : vector<8x256xf32>
    %cst_2 = arith.constant dense<0.000000e+00> : vector<8xf32>
    %8 = vector.multi_reduction <add>, %7, %cst_2 [1] : vector<8x256xf32> to vector<8xf32>
    %9 = vector.shape_cast %8 : vector<8xf32> to vector<8x1xf32>
    %c0_3 = arith.constant 0 : index
    %c0_4 = arith.constant 0 : index
    %10 = vector.load %arg5[%c0_3, %c0_4] : memref<8x1xf32, #tpu.memory_space<vmem>>, vector<8x1xf32>
    %11 = arith.addf %10, %9 : vector<8x1xf32>
    %c0_5 = arith.constant 0 : index
    %c0_6 = arith.constant 0 : index
    %12 = vector.load %arg5[%c0_5, %c0_6] : memref<8x1xf32, #tpu.memory_space<vmem>>, vector<8x1xf32>
    tpu.vector_store %arg5[%c0_5, %c0_6], %11 {strides = array<i32>} : memref<8x1xf32, #tpu.memory_space<vmem>>, vector<8x1xf32>,
    %c0_i32_7 = arith.constant 0 : i32
    %13 = arith.cmpi eq, %arg1, %c0_i32_7 : i32
    %14 = arith.extui %13 : i1 to i32
    %c0_i32_8 = arith.constant 0 : i32
    %15 = arith.cmpi ne, %14, %c0_i32_8 : i32
    scf.if %15 {
      %c0_9 = arith.constant 0 : index
      %c0_10 = arith.constant 0 : index
      %16 = vector.load %arg5[%c0_9, %c0_10] : memref<8x1xf32, #tpu.memory_space<vmem>>, vector<8x1xf32>
      %17 = math.log %16 : vector<8x1xf32>
      %cst_11 = arith.constant 5.54517746 : f32
      %18 = vector.broadcast %cst_11 : f32 to vector<8x1xf32>
      %19 = arith.subf %17, %18 : vector<8x1xf32>
      %cst_12 = arith.constant 0.333333343 : f32
      %20 = vector.broadcast %cst_12 : f32 to vector<8x1xf32>
      %21 = arith.mulf %19, %20 : vector<8x1xf32>
      %22 = math.exp %21 : vector<8x1xf32>
      %c0_13 = arith.constant 0 : index
      %c0_14 = arith.constant 0 : index
      %23 = vector.load %arg4[%c0_13, %c0_14] : memref<8x1xf32, #tpu.memory_space<vmem>>, vector<8x1xf32>
      tpu.vector_store %arg4[%c0_13, %c0_14], %22 {strides = array<i32>} : memref<8x1xf32, #tpu.memory_space<vmem>>, vector<8x1xf32>,
    } else {
    }
    return
  }
  func.func @transform_0(%arg0: i32, %arg1: i32) -> i32 {
    %c0_i32 = arith.constant 0 : i32
    %c0_i32_0 = arith.constant 0 : i32
    return %c0_i32 : i32
  }
  func.func @transform_1(%arg0: i32, %arg1: i32) -> (i32, i32) {
    %c0_i32 = arith.constant 0 : i32
    return %arg0, %arg1 : i32, i32
  }
  func.func @transform_2(%arg0: i32, %arg1: i32) -> (i32, i32) {
    %c0_i32 = arith.constant 0 : i32
    %c0_i32_0 = arith.constant 0 : i32
    return %arg0, %c0_i32 : i32, i32
  }
}

</mosaic_0001>

<bundles_post_ra>
// kernel: tpu_custom_call.1
= control target key start
LH: loop header
LB: loop body
LE: loop exit
PB: predicated region body
PF: predicated region fallthrough
CT: control target
= control target key end

     0   :  { %8 = vsyncpa [#allocation5], 0  ;;  %s96_s12 = smov [#allocation4]   ;;  %s122_s0 = inlined_call_operand.<no memory space> [shape: f32[1], index: 0, kind: input, shape index: {}]   ;;  %s123_s1 = inlined_call_operand.hbm [shape: f32[8,256], index: 1, kind: input, shape index: {}]   ;;  %s124_s2 = inlined_call_operand.vmem [shape: f32[8,1], index: 2, kind: output, shape index: {}]  }
   0x1   :  { %s16_s11 = sshll.u32 %s123_s1, 4  ;;  %s18_s13 = sshll.u32 %s96_s12, 4  ;;  %s17_s11 = int_to_ptr.hbm [resolvable:$true] %s16_s11  ;;  %s19_s13 = int_to_ptr.vmem [resolvable:$true] %s18_s13 }
   0x2   :  { %21 = dma.hbm_to_vmem [thread:$0]  %s17_s11, 256, %s19_s13, [#allocation5]  }
   0x3   :  { %94 = dma.done.wait [#allocation5], 256  }
   0x4   :  { %95 = vsyncadd [#allocation5], 4294967040  ;;  %vm30_vm0 = vcmask 7168   ;;  %v97_v0 = vmov 0.0   ;;  %v32_v1 = vld [vmem:[#allocation4] sm:$0xff]  ;;  %v33_v2 = vld [vmem:[#allocation4 + $0x8] sm:$0xff] }
   0x5   :  { %31 = vst.msk [vmem:[#allocation2] sm:$0xff] %vm30_vm0, %v97_v0  ;;  %v34_v3 = vmax.f32 %v32_v1, 1e-06  ;;  %v35_v4 = vmax.f32 %v33_v2, 1e-06 }
   0x7   :  { %v36_v5 = vmul.f32 %v34_v3, %v34_v3  ;;  %v37_v6 = vmul.f32 %v35_v4, %v35_v4 }
   0x9   :  { %v38_v7 = vmul.f32 %v36_v5, %v34_v3  ;;  %v39_v8 = vmul.f32 %v37_v6, %v35_v4 }
   0xb   :  { %v40_v9 = vadd.f32 %v39_v8, %v38_v7 }
   0xc   :  { %v43_v10 = vld [vmem:[#allocation2] sm:$0xff] }
   0xd   :  { %41 = vadd.xlane.f32.xlu0 %v40_v9 }
  0x80   :  { %v42_v11 = vpop.xlane.xlu0 %41 }
  0x81   :  { %v44_v12 = vadd.f32 %v43_v10, %v42_v11 }
  0x83   :  { %46 = vst.msk [vmem:[#allocation2] sm:$0xff] %vm30_vm0, %v44_v12 }
  0x8a   :  { %v50_v13 = vld [vmem:[#allocation2] sm:$0xff] }
  0x8b   :  { %66 = vlog2.f32 %v50_v13 }
  0x91   :  { %v67_v14 = vpop.eup %66 }
  0x92   :  { %v52_v15 = vmul.f32 0.6931472, %v67_v14 }
  0x94   :  { %v63_v16 = vadd.f32 -5.5451775, %v52_v15 }
  0x96   :  { %v54_v17 = vmul.f32 0.33333334, %v63_v16 }
  0x98   :  { %v55_v18 = vmul.f32 1.442695, %v54_v17 }
  0x9a   :  { %68 = vpow2.f32 %v55_v18 }
  0xa0   :  { %v69_v19 = vpop.eup %68 }
  0xa1   :  { %57 = vst.msk [vmem:[%s124_s2] sm:$0xff] %vm30_vm0, %v69_v19 }
  0xa2   :  { %62 = vsyncpa [#allocation5], 1 }

</bundles_post_ra>
